<compile_context>
chip_gen: v5e
topology: v5e:2x2
jax: 0.10.0
libtpu: 0.0.40
codegen_flags: <defaults>
</compile_context>

<pallas_src>
import functools

import jax
import jax.numpy as jnp
from jax.experimental import pallas as pl
from jax.experimental.pallas import tpu as pltpu


# ---------------------------------------------------------------------------
# Shared epilogue: attn = sigmoid(fc(avg) + fc(max)) as a (C, 1) column.
# Both 1x1x1-conv matmuls are batched into one (C, 2) operand (no concat;
# built with an iota-select to stay layout-friendly).
# ---------------------------------------------------------------------------
def _attn_from_pooled(avg, mx, w1, w2):
    # avg, mx: (C, 1) f32;  w1: (Ch, C);  w2: (C, Ch)
    C = avg.shape[0]
    col = jax.lax.broadcasted_iota(jnp.int32, (C, 2), 1)
    pooled = jnp.where(col == 0, avg, mx)                              # (C, 2)
    h = jnp.maximum(
        jnp.dot(w1.astype(jnp.float32), pooled,
                preferred_element_type=jnp.float32), 0.0)              # (Ch, 2)
    z = jnp.dot(w2.astype(jnp.float32), h,
                preferred_element_type=jnp.float32)                    # (C, 2)
    return jax.nn.sigmoid(jnp.sum(z, axis=-1, keepdims=True))          # (C, 1)


# ---------------------------------------------------------------------------
# Fused single-pass kernel: pool -> MLP -> sigmoid -> scale, one sample/block.
# ---------------------------------------------------------------------------
def _fused_kernel(x_ref, w1_ref, w2_ref, o_ref, *, inv_s):
    x = x_ref[0]                                         # (C, S)
    xf = x.astype(jnp.float32)
    avg = jnp.sum(xf, axis=-1, keepdims=True) * jnp.float32(inv_s)     # (C, 1)
    mx = jnp.max(xf, axis=-1, keepdims=True)                           # (C, 1)
    attn = _attn_from_pooled(avg, mx, w1_ref[...], w2_ref[...])        # (C, 1)
    o_ref[0] = x * attn.astype(x.dtype)


# ---------------------------------------------------------------------------
# Streaming pass 1: running sum/max over spatial tiles + MLP epilogue -> attn
# ---------------------------------------------------------------------------
def _pool_attn_kernel(x_ref, w1_ref, w2_ref, attn_ref, sum_sc, max_sc,
                      *, s_true, tile_s, ragged):
    j = pl.program_id(1)
    j_last = pl.num_programs(1) - 1

    @pl.when(j == 0)
    def _():
        sum_sc[...] = jnp.zeros_like(sum_sc)
        max_sc[...] = jnp.full_like(max_sc, -jnp.inf)

    x = x_ref[0].astype(jnp.float32)                     # (C, tile_s)

    def accumulate(xs, xm):
        sum_sc[...] += jnp.sum(xs, axis=-1, keepdims=True)
        max_sc[...] = jnp.maximum(max_sc[...],
                                  jnp.max(xm, axis=-1, keepdims=True))

    if ragged:
        # Only the last tile overhangs the true spatial extent.  Pallas OOB
        # block reads are undefined, so mask BOTH the sum and the max there;
        # full tiles take the unmasked (cheaper) path.
        @pl.when(j != j_last)
        def _():
            accumulate(x, x)

        @pl.when(j == j_last)
        def _():
            col = jax.lax.broadcasted_iota(jnp.int32, x.shape, 1) + j * tile_s
            valid = col < s_true
            accumulate(jnp.where(valid, x, 0.0),
                       jnp.where(valid, x, -jnp.inf))
    else:
        accumulate(x, x)

    @pl.when(j == j_last)
    def _():
        # Tiny 1x1x1-conv MLP + sigmoid: once per sample, not per tile.
        avg = sum_sc[...] * jnp.float32(1.0 / s_true)
        attn = _attn_from_pooled(avg, max_sc[...], w1_ref[...], w2_ref[...])
        attn_ref[0] = attn.astype(attn_ref.dtype)


# ---------------------------------------------------------------------------
# Streaming pass 2: out = x * attn (pure HBM-bandwidth bound, no conversions)
# ---------------------------------------------------------------------------
def _scale_kernel(attn_ref, x_ref, o_ref):
    # attn_ref: (1, C, 1) in x.dtype; x_ref / o_ref: (1, C, tile_s)
    o_ref[0] = x_ref[0] * attn_ref[0]


# ---------------------------------------------------------------------------
# Generation-aware VMEM budgeting (v5e/v6e: 128 MiB, v7x: 64 MiB per TC)
# ---------------------------------------------------------------------------
def _vmem_budget_and_limit():
    try:
        cap = int(pltpu.get_tpu_info().vmem_capacity_bytes)
    except Exception:
        cap = 64 * 1024 * 1024                 # most conservative (v7x per-TC)
    cap = max(32 * 1024 * 1024, min(cap, 128 * 1024 * 1024))
    # Live tile-buffer working-set budget: ~24 MiB on v7x, 48 MiB on v5e/v6e.
    budget = min((cap * 3) // 8, 48 * 1024 * 1024)
    # Scoped-VMEM limit requested from the compiler (leave internal headroom).
    limit = min((cap * 7) // 8, 96 * 1024 * 1024)
    return int(budget), int(max(limit, budget))


def _tile_cols(C, S, itemsize, budget, live_bufs):
    """Lane-dense spatial tile width sized from bytes, not a fixed column cap."""
    per_buf = max(budget // live_bufs, 128 * C * itemsize)
    cols = per_buf // max(C * itemsize, 1)
    cols = max(128, (cols // 128) * 128)
    cols = min(cols, pl.cdiv(S, 128) * 128)    # never larger than needed
    return int(cols)


# ---------------------------------------------------------------------------
# Wrapper
# ---------------------------------------------------------------------------
def channel_attention_3d(x, w1, w2, *, tile_s=None, force_streaming=False):
    """x: (N, C, D, H, W); w1: (C//r, C); w2: (C, C//r). Returns x * attn."""
    N, C, D, H, W = x.shape
    S = D * H * W
    Ch = w1.shape[0]
    itemsize = jnp.dtype(x.dtype).itemsize

    budget, vmem_limit = _vmem_budget_and_limit()
    x3 = x.reshape(N, C, S)                    # metadata-only reshape, no copy

    weights_bytes = 2 * (w1.size + w2.size) * 4
    fused_ws = 4 * C * S * itemsize + weights_bytes + (1 << 20)

    if not force_streaming and tile_s is None and fused_ws <= budget:
        # ---------------- fused single pass: x read once, written once -------
        out3 = pl.pallas_call(
            functools.partial(_fused_kernel, inv_s=1.0 / S),
            out_shape=jax.ShapeDtypeStruct((N, C, S), x.dtype),
            grid_spec=pltpu.PrefetchScalarGridSpec(
                num_scalar_prefetch=0,
                grid=(N,),
                in_specs=[
                    pl.BlockSpec((1, C, S), lambda n: (n, 0, 0)),
                    pl.BlockSpec((Ch, C), lambda n: (0, 0)),
                    pl.BlockSpec((C, Ch), lambda n: (0, 0)),
                ],
                out_specs=pl.BlockSpec((1, C, S), lambda n: (n, 0, 0)),
            ),
            compiler_params=pltpu.CompilerParams(
                dimension_semantics=("parallel",),
                vmem_limit_bytes=vmem_limit,
            ),
        )(x3, w1, w2)
        return out3.reshape(N, C, D, H, W)

    # --------------------- streaming two-pass fallback -----------------------
    tile1 = tile_s if tile_s is not None else _tile_cols(C, S, itemsize, budget, 2)
    tile2 = tile_s if tile_s is not None else _tile_cols(C, S, itemsize, budget, 4)
    assert tile1 % 128 == 0 and tile2 % 128 == 0, \
        "spatial tiles must be multiples of 128 (lane-dense)"

    nt1 = pl.cdiv(S, tile1)
    nt2 = pl.cdiv(S, tile2)

    # Pass 1: pooled sum/max + fc + sigmoid -> attn (N, C, 1) in x.dtype.
    attn = pl.pallas_call(
        functools.partial(_pool_attn_kernel, s_true=S, tile_s=tile1,
                          ragged=(S % tile1 != 0)),
        out_shape=jax.ShapeDtypeStruct((N, C, 1), x.dtype),
        grid_spec=pltpu.PrefetchScalarGridSpec(
            num_scalar_prefetch=0,
            grid=(N, nt1),
            in_specs=[
                pl.BlockSpec((1, C, tile1), lambda n, j: (n, 0, j)),
                pl.BlockSpec((Ch, C), lambda n, j: (0, 0)),
                pl.BlockSpec((C, Ch), lambda n, j: (0, 0)),
            ],
            out_specs=pl.BlockSpec((1, C, 1), lambda n, j: (n, 0, 0)),
            scratch_shapes=[
                pltpu.VMEM((C, 1), jnp.float32),   # running sum
                pltpu.VMEM((C, 1), jnp.float32),   # running max
            ],
        ),
        compiler_params=pltpu.CompilerParams(
            dimension_semantics=("parallel", "arbitrary"),
            vmem_limit_bytes=vmem_limit,
        ),
    )(x3, w1, w2)

    # Pass 2: out = x * attn, streamed; unpadded output, no final slice.
    out3 = pl.pallas_call(
        _scale_kernel,
        out_shape=jax.ShapeDtypeStruct((N, C, S), x.dtype),
        grid_spec=pltpu.PrefetchScalarGridSpec(
            num_scalar_prefetch=0,
            grid=(N, nt2),
            in_specs=[
                pl.BlockSpec((1, C, 1), lambda n, j: (n, 0, 0)),
                pl.BlockSpec((1, C, tile2), lambda n, j: (n, 0, j)),
            ],
            out_specs=pl.BlockSpec((1, C, tile2), lambda n, j: (n, 0, j)),
        ),
        compiler_params=pltpu.CompilerParams(
            dimension_semantics=("parallel", "parallel"),
            vmem_limit_bytes=vmem_limit,
        ),
    )(attn, x3)

    return out3.reshape(N, C, D, H, W)


# ---------------------------------------------------------------------------
# Pure-JAX reference matching the PyTorch forward
# ---------------------------------------------------------------------------
def _reference(x, w1, w2):
    avg = jnp.mean(x, axis=(2, 3, 4))                    # (N, C)
    mx = jnp.max(x, axis=(2, 3, 4))                      # (N, C)

    def fc(v):                                           # v: (N, C)
        h = jnp.maximum(v @ w1.T, 0.0)                   # (N, C//r)
        return h @ w2.T                                  # (N, C)

    attn = jax.nn.sigmoid(fc(avg) + fc(mx))              # (N, C)
    return x * attn[:, :, None, None, None]


if __name__ == "__main__":
    key = jax.random.PRNGKey(0)
    k_x, k_w1, k_w2, k_x2 = jax.random.split(key, 4)

    N, C, ratio = 2, 32, 8
    Ch = C // ratio
    # Conv3d(C, C//r, 1, bias=False).weight -> (Ch, C, 1, 1, 1) squeezed, etc.
    w1 = jax.random.normal(k_w1, (Ch, C), dtype=jnp.float32) * 0.1
    w2 = jax.random.normal(k_w2, (C, Ch), dtype=jnp.float32) * 0.1

    # Ragged spatial extent (4*7*7 = 196): auto dispatch -> fused single pass;
    # tile_s=128 -> two-tile streaming path with a masked ragged last tile.
    x = jax.random.normal(k_x, (N, C, 4, 7, 7), dtype=jnp.float32)
    ref = _reference(x, w1, w2)

    out_fused = jax.block_until_ready(channel_attention_3d(x, w1, w2))
    assert out_fused.shape == x.shape
    assert jnp.allclose(out_fused, ref, atol=1e-5, rtol=1e-5), "fused mismatch vs reference"

    out_stream = jax.block_until_ready(channel_attention_3d(x, w1, w2, tile_s=128))
    assert jnp.allclose(out_stream, ref, atol=1e-5, rtol=1e-5), "ragged streaming mismatch"

    # Lane-aligned spatial extent (4*8*8 = 256): non-ragged streaming path.
    x2 = jax.random.normal(k_x2, (N, C, 4, 8, 8), dtype=jnp.float32)
    ref2 = _reference(x2, w1, w2)
    out_stream2 = jax.block_until_ready(
        channel_attention_3d(x2, w1, w2, tile_s=128, force_streaming=True))
    assert jnp.allclose(out_stream2, ref2, atol=1e-5, rtol=1e-5), "aligned streaming mismatch"

    print("KERNEL_OK")
</pallas_src>

<mosaic_0001>
module attributes {stable_mosaic.version = 11 : i64} {
  func.func @_fused_kernel(%arg0: i32, %arg1: memref<1x32x196xf32, #tpu.memory_space<vmem>>, %arg2: memref<4x32xf32, #tpu.memory_space<vmem>>, %arg3: memref<32x4xf32, #tpu.memory_space<vmem>>, %arg4: memref<1x32x196xf32, #tpu.memory_space<vmem>>) attributes {dimension_semantics = [#tpu.dimension_semantics<parallel>], iteration_bounds = array<i64: 2>, scalar_prefetch = 0 : i64, scratch_operands = 0 : i64, tpu.core_type = #tpu.core_type<tc>, window_params = [{transform_indices = @transform_0, window_bounds = array<i64: 1, 32, 196>}, {pipeline_mode = #tpu.pipeline_mode<synchronous>, transform_indices = @transform_1, window_bounds = array<i64: 4, 32>}, {pipeline_mode = #tpu.pipeline_mode<synchronous>, transform_indices = @transform_2, window_bounds = array<i64: 32, 4>}, {transform_indices = @transform_3, window_bounds = array<i64: 1, 32, 196>}]} {
    %c0 = arith.constant 0 : index
    %c0_0 = arith.constant 0 : index
    %c0_1 = arith.constant 0 : index
    %0 = vector.load %arg1[%c0, %c0_0, %c0_1] : memref<1x32x196xf32, #tpu.memory_space<vmem>>, vector<1x32x196xf32>
    %1 = vector.shape_cast %0 : vector<1x32x196xf32> to vector<32x196xf32>
    %cst = arith.constant dense<0.000000e+00> : vector<32xf32>
    %2 = vector.multi_reduction <add>, %1, %cst [1] : vector<32x196xf32> to vector<32xf32>
    %3 = vector.shape_cast %2 : vector<32xf32> to vector<32x1xf32>
    %cst_2 = arith.constant 0.00510204071 : f32
    %4 = vector.broadcast %cst_2 : f32 to vector<32x1xf32>
    %5 = arith.mulf %3, %4 : vector<32x1xf32>
    %cst_3 = arith.constant dense<0xFF800000> : vector<32xf32>
    %6 = vector.multi_reduction <maximumf>, %1, %cst_3 [1] : vector<32x196xf32> to vector<32xf32>
    %7 = vector.shape_cast %6 : vector<32xf32> to vector<32x1xf32>
    %c0_4 = arith.constant 0 : index
    %c0_5 = arith.constant 0 : index
    %8 = vector.load %arg2[%c0_4, %c0_5] : memref<4x32xf32, #tpu.memory_space<vmem>>, vector<4x32xf32>
    %c0_6 = arith.constant 0 : index
    %c0_7 = arith.constant 0 : index
    %9 = vector.load %arg3[%c0_6, %c0_7] : memref<32x4xf32, #tpu.memory_space<vmem>>, vector<32x4xf32>
    %10 = tpu.iota {dimensions = array<i32: 1>} : vector<32x2xi32>
    %c0_i32 = arith.constant 0 : i32
    %11 = vector.broadcast %c0_i32 : i32 to vector<32x2xi32>
    %12 = arith.cmpi eq, %10, %11 : vector<32x2xi32>
    %13 = vector.shape_cast %5 : vector<32x1xf32> to vector<32x1xf32>
    %14 = vector.broadcast %13 : vector<32x1xf32> to vector<32x2xf32>
    %15 = vector.shape_cast %7 : vector<32x1xf32> to vector<32x1xf32>
    %16 = vector.broadcast %15 : vector<32x1xf32> to vector<32x2xf32>
    %17 = arith.select %12, %14, %16 : vector<32x2xi1>, vector<32x2xf32>
    %cst_8 = arith.constant dense<0.000000e+00> : vector<4x2xf32>
    %18 = tpu.matmul %8, %17, %cst_8 {dimension_numbers = #tpu.dot_dimension_numbers<[1], [0], [0], [1], [0, 0, 1, 1], [], []>} : vector<4x32xf32>, vector<32x2xf32>, vector<4x2xf32> -> vector<4x2xf32>
    %cst_9 = arith.constant 0.000000e+00 : f32
    %19 = vector.broadcast %cst_9 : f32 to vector<4x2xf32>
    %20 = arith.maximumf %18, %19 : vector<4x2xf32>
    %cst_10 = arith.constant dense<0.000000e+00> : vector<32x2xf32>
    %21 = tpu.matmul %9, %20, %cst_10 {dimension_numbers = #tpu.dot_dimension_numbers<[1], [0], [0], [1], [0, 0, 1, 1], [], []>} : vector<32x4xf32>, vector<4x2xf32>, vector<32x2xf32> -> vector<32x2xf32>
    %cst_11 = arith.constant dense<0.000000e+00> : vector<32xf32>
    %22 = vector.multi_reduction <add>, %21, %cst_11 [1] : vector<32x2xf32> to vector<32xf32>
    %23 = vector.shape_cast %22 : vector<32xf32> to vector<32x1xf32>
    %24 = arith.negf %23 : vector<32x1xf32>
    %25 = math.exp %24 : vector<32x1xf32>
    %cst_12 = arith.constant 1.000000e+00 : f32
    %26 = vector.broadcast %cst_12 : f32 to vector<32x1xf32>
    %27 = arith.addf %26, %25 : vector<32x1xf32>
    %28 = arith.divf %26, %27 : vector<32x1xf32>
    %29 = vector.broadcast %28 : vector<32x1xf32> to vector<32x196xf32>
    %30 = arith.mulf %1, %29 : vector<32x196xf32>
    %c0_13 = arith.constant 0 : index
    %c0_14 = arith.constant 0 : index
    %c0_15 = arith.constant 0 : index
    %31 = vector.load %arg4[%c0_13, %c0_14, %c0_15] : memref<1x32x196xf32, #tpu.memory_space<vmem>>, vector<1x32x196xf32>
    %32 = vector.shape_cast %31 : vector<1x32x196xf32> to vector<32x196xf32>
    %33 = vector.shape_cast %30 : vector<32x196xf32> to vector<1x32x196xf32>
    tpu.vector_store %arg4[%c0_13, %c0_14, %c0_15], %33 {strides = array<i32>} : memref<1x32x196xf32, #tpu.memory_space<vmem>>, vector<1x32x196xf32>,
    return
  }
  func.func @transform_0(%arg0: i32) -> (i32, i32, i32) {
    %c0_i32 = arith.constant 0 : i32
    %c0_i32_0 = arith.constant 0 : i32
    %c0_i32_1 = arith.constant 0 : i32
    return %arg0, %c0_i32, %c0_i32_0 : i32, i32, i32
  }
  func.func @transform_1(%arg0: i32) -> (i32, i32) {
    %c0_i32 = arith.constant 0 : i32
    %c0_i32_0 = arith.constant 0 : i32
    %c0_i32_1 = arith.constant 0 : i32
    return %c0_i32, %c0_i32_0 : i32, i32
  }
  func.func @transform_2(%arg0: i32) -> (i32, i32) {
    %c0_i32 = arith.constant 0 : i32
    %c0_i32_0 = arith.constant 0 : i32
    %c0_i32_1 = arith.constant 0 : i32
    return %c0_i32, %c0_i32_0 : i32, i32
  }
  func.func @transform_3(%arg0: i32) -> (i32, i32, i32) {
    %c0_i32 = arith.constant 0 : i32
    %c0_i32_0 = arith.constant 0 : i32
    %c0_i32_1 = arith.constant 0 : i32
    return %arg0, %c0_i32, %c0_i32_0 : i32, i32, i32
  }
}

</mosaic_0001>

<bundles_post_ra>
// kernel: tpu_custom_call.1
= control target key start
LH: loop header
LB: loop body
LE: loop exit
PB: predicated region body
PF: predicated region fallthrough
CT: control target
= control target key end

     0   :  { %8 = vsyncpa [#allocation3], 0  ;;  %s949_s0 = inlined_call_operand.hbm [shape: f32[2,32,196], index: 0, kind: input, shape index: {}]   ;;  %s950_s1 = inlined_call_operand.vmem [shape: f32[4,32], index: 1, kind: input, shape index: {}]   ;;  %s951_s2 = inlined_call_operand.vmem [shape: f32[32,4], index: 2, kind: input, shape index: {}]   ;;  %s952_s3 = inlined_call_operand.hbm [shape: f32[2,32,196], index: 3, kind: output, shape index: {}]  }
   0x1   :  { %10 = vsyncpa [#allocation3 + $0x1], 0 }
   0x2   :  { %11 = vsyncpa [#allocation4], 0 }
   0x3   :  { %13 = vsyncpa [#allocation4 + $0x1], 0  ;;  %s729_s12 = smov 0   ;;  %s731_s13 = smov 0  }
   0x4   :  { %s733_s14 = smov 0   ;;  %s735_s15 = smov 0  }
   0x5 LB: > { %s750_s16 = sadd.s32 4294967295, %s703_s15   ;;  %s513_s17 = sadd.s32 4294967294, %s703_s15   ;;  %s703_s15 = sphi %s735_s15, %s962_s15   ;;  %s699_s14 = sphi %s733_s14, %s961_s14   ;;  %s695_s13 = sphi %s731_s13, %s960_s13   ;;  %s691_s12 = sphi %s729_s12, %s959_s12  }
   0x6   : > { %s754_s18 = sadd.s32 1, %s703_s15   ;;  %s26_s19 = sadd.s32 1, %s699_s14 }
   0x7   : > { %s23_s20 = ssub.s32 %s703_s15, %s754_s18  ;;  %p33_p0 = scmp.ne.s32.totalorder %s699_s14, %s695_s13 }
   0x8   : > { %p24_p1 = scmp.eq.s32.totalorder %s23_s20, 0  ;;  %p34_p2 = scmp.eq.s32.totalorder %s703_s15, 0 }
   0x9   : > { %p39_p3 = scmp.ne.s32.totalorder %s695_s13, %s691_s12  ;;  %p40_p4 = scmp.eq.s32.totalorder %s750_s16, 0 }
   0xa   : > { %s766_s21 = scalar_select %p24_p1, %s699_s14, %s26_s19  }
   0xb   : > { %p768_p5 = por %p34_p2, %p33_p0  ;;  %p772_p6 = por %p40_p4, %p39_p3 }
   0xc   : > { %p105_p7 = scmp.eq.s32.totalorder %s750_s16, 1  ;;  %p111_p8 = scmp.eq.s32.totalorder %s513_s17, 1 }
   0xd   : > { %p553_p10 = scmp.lt.s32.totalorder %s703_s15, 2  ;;  %s137_s26 = sand.u32 1, %s699_s14  }
   0xe   : > { %p779_p11 = por %p105_p7, %p33_p0  ;;  %p783_p12 = por %p111_p8, %p39_p3 }
   0xf   : > { %s537_s27 = sshll.u32 %s703_s15, 6  ;;  %s516_s28 = sshll.u32 %s137_s26, 6 }
  0x10   : > { %s146_s4 = scalar_lea.hbm %s949_s0, %s537_s27  ;;  %s141_s6 = scalar_lea.vmem [#allocation2], %s516_s28 }
  0x11   : > { %s147_s5 = sshll.u32 %s146_s4, 4  ;;  %s149_s7 = sshll.u32 %s141_s6, 4  ;;  %s148_s5 = int_to_ptr.hbm [resolvable:$true] %s147_s5  ;;  %s150_s7 = int_to_ptr.vmem [resolvable:$true] %s149_s7 }
  0x12   : > { %p794_p13 = pnand %p553_p10, %p768_p5  ;;  %p519_p0 = scmp.ge.s32.totalorder %s703_s15, 1 }
  0x13   : > { %p157_p1 = scmp.lt.s32.totalorder %s703_s15, 3  ;;  %s138_s9 = scalar_lea.sflag [#allocation3], %s137_s26 }
  0x14   : > { %s607_s10 = sshra.s32 %s148_s5, 4  ;;  %p611_p3 = pneg %p794_p13  ;;  %s608_s10 = int_to_ptr.hbm [resolvable:$true] %s607_s10 }
  0x15   : > { %s609_s11 = scalar_lea.hbm %s608_s10, 64  ;;  %s614_s20 = scalar_lea.hbm %s949_s0, 128 }
  0x16   : > { %p610_p2 = scmp.ne.s32.totalorder %s608_s10, %s609_s11  ;;  %p615_p5 = scmp.lt.s32.totalorder %s608_s10, %s949_s0 }
  0x17   : > { %p616_p8 = scmp.lt.s32.totalorder %s614_s20, %s609_s11 }
  0x18   : > { %p612_p4 = pnand %p611_p3, %p610_p2 }
  0x19   : > { %p617_p10 = por %p616_p8, %p615_p5 }
  0x1a   : > { %p613_p7 = pneg %p612_p4 }
  0x1c   : > { %p618_p9 = pnand %p617_p10, %p613_p7 }
  0x1e   : > { %621 = shalt.err (!%p618_p9)
}
  0x1f   : > { %s705_s26 = smov 256   ;;  %s706_s28 = smov 16  }
  0x20   : > { %548 = dma.hbm_to_vmem [thread:$0]  (!%p794_p13), %s148_s5, 1024, %s150_s7, %s138_s9, %s705_s26, %s705_s26, %s706_s28  }
  0x21   : > { %p158_p2 = pnand %p519_p0, %p157_p1 }
  0x22   : > { %s815_s29 = sand.u32 (!%p158_p2), 1, %s695_s13  }
  0x23   : > { %161 = sbr.rel (%p158_p2) target bundleno = 603 (0x25b), region = 32  ;;  %s520_s30 = sshll.u32 (!%p158_p2), %s815_s29, 6 }
  0x24   : > { %s164_s4 = scalar_lea.sflag (!%p158_p2), [#allocation3], %s815_s29  ;;  %s167_s6 = scalar_lea.vmem (!%p158_p2), [#allocation2], %s520_s30 }
  0x28   : > { %682 = dma.done.wait (%p772_p6), %s164_s4, 1024  }
  0x29   : > { %684 = vsyncadd (%p772_p6), %s164_s4, 4294966272  ;;  %vm199_vm0 = vcmask 556032   ;;  %v825_v0 = vld [vmem:[%s167_s6 + $0x30] sm:$0xff]  ;;  %v827_v1 = vld [vmem:[%s167_s6 + $0x38] sm:$0xff]  ;;  %v241_v24 = vlaneseq  ;;  %vm248_vm2 = vcmask 261120   ;;  %vm286_vm3 = vcmask 1043456  }
  0x2a   : > { %v829_v2 = vld [vmem:[%s167_s6 + $0x20] sm:$0xff]  ;;  %v212_v3 = vsel %vm199_vm0, %v827_v1, 0.0  ;;  %v232_v4 = vsel %vm199_vm0, %v827_v1, -inf  ;;  %v835_v5 = vld [vmem:[%s167_s6 + $0x28] sm:$0xff]  ;;  %v841_v9 = vld [vmem:[%s167_s6 + $0x18] sm:$0xff]  ;;  %vm273_vm4 = vcmask 31744  }
  0x2b   : > { %v213_v6 = vadd.f32 %v212_v3, %v825_v0  ;;  %v233_v7 = vmax.f32 %v825_v0, %v232_v4  ;;  %v228_v8 = vsel %vm199_vm0, %v835_v5, -inf  ;;  %v844_v11 = vld [vmem:[%s167_s6 + $0x8] sm:$0xff]  ;;  %v208_v12 = vsel %vm199_vm0, %v835_v5, 0.0  ;;  %v848_v13 = vld [vmem:[%s167_s6 + $0x10] sm:$0xff]  ;;  %v852_v15 = vld [vmem:[%s167_s6] sm:$0xff]  ;;  %s891_s22 = scalar_lea.vmem [#allocation5], %s520_s30 }
  0x2c   : > { %v229_v10 = vmax.f32 %v829_v2, %v228_v8  ;;  %v204_v14 = vsel %vm199_vm0, %v841_v9, 0.0  ;;  %v200_v16 = vsel %vm199_vm0, %v844_v11, 0.0  ;;  %v209_v17 = vadd.f32 %v208_v12, %v829_v2  ;;  %v236_v42 = vld [vmem:[%s950_s1] sm:$0xf]  ;;  %v238_v46 = vld [vmem:[%s951_s2 + $0x8] sm:$0xff]  ;;  %v240_v47 = vld [vmem:[%s951_s2 + $0x18] sm:$0xff] }
  0x2d   : > { %214 = vadd.xlane.f32.xlu0 %v213_v6  ;;  %234 = vmax.xlane.f32.xlu1 %v233_v7  ;;  %v205_v18 = vadd.f32 %v204_v14, %v848_v13  ;;  %v201_v19 = vadd.f32 %v200_v16, %v852_v15  ;;  %v224_v20 = vsel %vm199_vm0, %v841_v9, -inf  ;;  %v220_v21 = vsel %vm199_vm0, %v844_v11, -inf  ;;  %v237_v45 = vld [vmem:[%s951_s2] sm:$0xff]  ;;  %v239_v48 = vld [vmem:[%s951_s2 + $0x10] sm:$0xff]  ;;  %s538_s27 = sshll.u32 %s750_s16, 6  ;;  %s437_s30 = sshll.u32 %s891_s22, 4  ;;  %s438_s30 = int_to_ptr.vmem [resolvable:$true] %s437_s30 }
  0x2e   : > { %230 = vmax.xlane.f32.xlu2 %v229_v10  ;;  %v225_v22 = vmax.f32 %v848_v13, %v224_v20  ;;  %v221_v23 = vmax.f32 %v852_v15, %v220_v21  ;;  %v242_v25 = vand.u32 127, %v241_v24  ;;  %vm319_vm5 = vcmask 15360   ;;  %s436_s28 = scalar_lea.hbm %s952_s3, %s538_s27  ;;  %s425_s6 = scalar_lea.sflag [#allocation4], %s815_s29 }
  0x2f   : > { %s439_s4 = sshll.u32 %s436_s28, 4  ;;  %s657_s9 = scalar_lea.hbm %s952_s3, 128  ;;  %s440_s4 = int_to_ptr.hbm [resolvable:$true] %s439_s4 }
  0x30   : > { %vm243_vm1 = vcmp.eq.s32.totalorder %v242_v25, 0  ;;  %s651_s23 = sshra.s32 %s440_s4, 4  ;;  %s652_s23 = int_to_ptr.hbm [resolvable:$true] %s651_s23 }
  0x31   : > { %s653_s5 = scalar_lea.hbm %s652_s23, 64  ;;  %p658_p0 = scmp.lt.s32.totalorder %s652_s23, %s952_s3 }
  0x32   : > { %p654_p6 = scmp.ne.s32.totalorder %s652_s23, %s653_s5  ;;  %p659_p1 = scmp.lt.s32.totalorder %s657_s9, %s653_s5 }
  0x34   : > { %p655_p9 = pnand %p654_p6, %p779_p11  ;;  %p660_p3 = por %p659_p1, %p658_p0 }
  0x35   : > { %210 = vadd.xlane.f32.xlu0 %v209_v17  ;;  %206 = vadd.xlane.f32.xlu1 %v205_v18 }
  0x36   : > { %202 = vadd.xlane.f32.xlu2 %v201_v19  ;;  %p656_p13 = pneg %p655_p9 }
  0x38   : > { %p661_p4 = pnand %p660_p3, %p656_p13 }
  0x3d   : > { %226 = vmax.xlane.f32.xlu0 %v225_v22  ;;  %222 = vmax.xlane.f32.xlu1 %v221_v23 }
  0xa0   : > { %v215_v26 = vpop.xlane.xlu0 %214  ;;  %v235_v27 = vpop.xlane.xlu1 %234 }
  0xa1   : > { %v219_v28 = vmul.f32 0.0051020407, %v215_v26  ;;  %v231_v29 = vpop.xlane.xlu2 %230 }
  0xa3   : > { %v247_v30 = vsel %vm243_vm1, %v219_v28, %v235_v27 }
  0xa4   : > { %264 = vmatpush.msra.mxu0 %v247_v30 }
  0xa8   : > { %v211_v31 = vpop.xlane.xlu0 %210  ;;  %v207_v32 = vpop.xlane.xlu1 %206 }
  0xa9   : > { %v218_v33 = vmul.f32 0.0051020407, %v211_v31  ;;  %v203_v34 = vpop.xlane.xlu2 %202  ;;  %v217_v37 = vmul.f32 0.0051020407, %v207_v32 }
  0xaa   : > { %v216_v36 = vmul.f32 0.0051020407, %v203_v34 }
  0xab   : > { %v246_v35 = vsel %vm243_vm1, %v218_v33, %v231_v29 }
  0xac   : > { %265 = vmatpush.msra.mxu0 %v246_v35 }
  0xb0   : > { %v227_v38 = vpop.xlane.xlu0 %226  ;;  %v223_v39 = vpop.xlane.xlu1 %222 }
  0xb1   : > { %v245_v40 = vsel %vm243_vm1, %v217_v37, %v227_v38  ;;  %v244_v41 = vsel %vm243_vm1, %v216_v36, %v223_v39 }
  0xb2   : > { %266 = vmatpush.msra.mxu0 %v245_v40 }
  0xb4   : > { %267 = vmatpush.msra.mxu0 %v244_v41 }
  0xb5   : > { %522 = vmatmul.msk.f32.vlgmr.msra.gmra.mxu0 %vm248_vm2, %v236_v42 }
 0x132   : > { %v269_v43 = vpop.f32.mrf.mxu0 }
 0x133   : > { %v272_v44 = vmax.f32 %v269_v43, 0.0 }
 0x135   : > { %523 = vmatpush.msk.msra.mxu1 %vm286_vm3, %v272_v44  ;;  %539 = vmatpush.msk.msra.mxu2 %vm286_vm3, %v272_v44 }
 0x136   : > { %540 = vmatpush.msk.msra.mxu3 %vm286_vm3, %v272_v44  ;;  %524 = vmatmul.msk.f32.vlgmr.msra.gmra.mxu1 %vm273_vm4, %v237_v45 }
 0x137   : > { %525 = vmatmul.msk.f32.vlgmr.msra.gmra.mxu2 %vm273_vm4, %v238_v46  ;;  %527 = vmatmul.msk.f32.vlgmr.msra.gmra.mxu3 %vm273_vm4, %v240_v47 }
 0x13f   : > { %526 = vmatmul.msk.f32.gmra.mxu2 %vm273_vm4, %v239_v48 }
 0x1b3   : > { %v307_v49 = vpop.f32.mrf.mxu1 }
 0x1b4   : > { %v320_v50 = vsel %vm319_vm5, %v307_v49, 0.0 }
 0x1b5   : > { %321 = vadd.xlane.f32.xlu2 %v320_v50 }
 0x1ba   : > { %v310_v51 = vpop.f32.mrf.mxu2  ;;  %v316_v52 = vpop.f32.mrf.mxu3 }
 0x1bb   : > { %v323_v53 = vsel %vm319_vm5, %v310_v51, 0.0  ;;  %v329_v54 = vsel %vm319_vm5, %v316_v52, 0.0 }
 0x1bc   : > { %324 = vadd.xlane.f32.xlu0 %v323_v53 }
 0x1bd   : > { %330 = vadd.xlane.f32.xlu2 %v329_v54 }
 0x1c2   : > { %v313_v55 = vpop.f32.mrf.mxu2 }
 0x1c3   : > { %v326_v56 = vsel %vm319_vm5, %v313_v55, 0.0 }
 0x1c4   : > { %327 = vadd.xlane.f32.xlu1 %v326_v56 }
 0x228   : > { %v322_v57 = vpop.xlane.xlu2 %321 }
 0x229   : > { %v528_v58 = vmul.f32 -1.442695, %v322_v57 }
 0x22b   : > { %591 = vpow2.f32 %v528_v58 }
 0x22f   : > { %v325_v59 = vpop.xlane.xlu0 %324 }
 0x230   : > { %v529_v60 = vmul.f32 -1.442695, %v325_v59  ;;  %v331_v61 = vpop.xlane.xlu2 %330 }
 0x231   : > { %v592_v62 = vpop.eup %591  ;;  %v531_v63 = vmul.f32 -1.442695, %v331_v61 }
 0x232   : > { %v344_v3 = vadd.f32 1.0, %v592_v62  ;;  %593 = vpow2.f32 %v529_v60 }
 0x233   : > { %595 = vpow2.f32 %v531_v63 }
 0x234   : > { %597 = vrcp.f32 %v344_v3  ;;  %v359_v18 = vand.u32 2147483648, %v344_v3  ;;  %vm353_vm6 = vweird.f32 %v344_v3  ;;  %v357_v20 = vand.u32 2147483647, %v344_v3 }
 0x236   : > { %v360_v26 = vor.u32 1.1754944e-38, %v359_v18  ;;  %vm358_vm9 = vcmp.eq.f32.partialorder %v357_v20, 8.507059e+37 }
 0x237   : > { %v328_v4 = vpop.xlane.xlu1 %327 }
 0x238   : > { %v594_v6 = vpop.eup %593  ;;  %v530_v7 = vmul.f32 -1.442695, %v328_v4 }
 0x239   : > { %v596_v8 = vpop.eup %595  ;;  %v345_v10 = vadd.f32 1.0, %v594_v6 }
 0x23a   : > { %v598_v12 = vpop.eup %597  ;;  %v347_v14 = vadd.f32 1.0, %v596_v8  ;;  %599 = vpow2.f32 %v530_v7 }
 0x23b   : > { %v349_v16 = vmul.f32 %v598_v12, %v344_v3  ;;  %601 = vrcp.f32 %v345_v10  ;;  %vm354_vm7 = vweird.f32 %v598_v12  ;;  %v374_v34 = vand.u32 2147483648, %v345_v10 }
 0x23c   : > { %603 = vrcp.f32 %v347_v14  ;;  %vm355_vm8 = vmor %vm353_vm6, %vm354_vm7  ;;  %v372_v37 = vand.u32 2147483647, %v345_v10  ;;  %v404_v38 = vand.u32 2147483648, %v347_v14  ;;  %vm398_vm11 = vweird.f32 %v347_v14 }
 0x23d   : > { %v350_v17 = vsub.f32 1.0, %v349_v16  ;;  %v402_v40 = vand.u32 2147483647, %v347_v14  ;;  %vm368_vm13 = vweird.f32 %v345_v10  ;;  %v375_v41 = vor.u32 1.1754944e-38, %v374_v34 }
 0x23e   : > { %vm373_vm15 = vcmp.eq.f32.partialorder %v372_v37, 8.507059e+37  ;;  %v405_v44 = vor.u32 1.1754944e-38, %v404_v38 }
 0x23f   : > { %v351_v19 = vmul.f32 %v598_v12, %v350_v17  ;;  %vm403_vm2 = vcmp.eq.f32.partialorder %v402_v40, 8.507059e+37 }
 0x240   : > { %v600_v21 = vpop.eup %599 }
 0x241   : > { %v602_v22 = vpop.eup %601  ;;  %v352_v23 = vadd.f32 %v598_v12, %v351_v19  ;;  %v884_v24 = vadd.f32 1.0, %v600_v21 }
 0x242   : > { %v604_v25 = vpop.eup %603  ;;  %v364_v27 = vmul.f32 %v602_v22, %v345_v10  ;;  %vm369_vm10 = vweird.f32 %v602_v22 }
 0x243   : > { %v356_v28 = vsel %vm355_vm8, %v598_v12, %v352_v23  ;;  %v394_v29 = vmul.f32 %v604_v25, %v347_v14  ;;  %605 = vrcp.f32 %v884_v24  ;;  %vm399_vm12 = vweird.f32 %v604_v25  ;;  %vm370_vm14 = vmor %vm368_vm13, %vm369_vm10 }
 0x244   : > { %v361_v30 = vsel %vm358_vm9, %v360_v26, %v356_v28  ;;  %v365_v31 = vsub.f32 1.0, %v364_v27  ;;  %vm400_vm1 = vmor %vm398_vm11, %vm399_vm12  ;;  %v389_v54 = vand.u32 2147483648, %v884_v24  ;;  %v387_v56 = vand.u32 2147483647, %v884_v24 }
 0x245   : > { %v408_v32 = vmul.f32 %v361_v30, %v852_v15  ;;  %v409_v33 = vmul.f32 %v361_v30, %v844_v11  ;;  %v395_v35 = vsub.f32 1.0, %v394_v29  ;;  %vm383_vm4 = vweird.f32 %v884_v24 }
 0x246   : > { %v366_v36 = vmul.f32 %v602_v22, %v365_v31  ;;  %vm388_vm6 = vcmp.eq.f32.partialorder %v387_v56, 8.507059e+37 }
 0x247   : > { %416 = vst [vmem:[%s891_s22] sm:$0xff] %v408_v32  ;;  %v396_v39 = vmul.f32 %v604_v25, %v395_v35 }
 0x248   : > { %417 = vst.msk [vmem:[%s891_s22 + $0x8] sm:$0xff] %vm199_vm0, %v409_v33  ;;  %v367_v11 = vadd.f32 %v602_v22, %v366_v36 }
 0x249   : > { %v606_v15 = vpop.eup %605  ;;  %v397_v42 = vadd.f32 %v604_v25, %v396_v39 }
 0x24a   : > { %v371_v43 = vsel %vm370_vm14, %v602_v22, %v367_v11  ;;  %v379_v45 = vmul.f32 %v606_v15, %v884_v24  ;;  %vm384_vm3 = vweird.f32 %v606_v15 }
 0x24b   : > { %v376_v46 = vsel %vm373_vm15, %v375_v41, %v371_v43  ;;  %v401_v47 = vsel %vm400_vm1, %v604_v25, %v397_v42  ;;  %vm385_vm5 = vmor %vm383_vm4, %vm384_vm3 }
 0x24c   : > { %v410_v48 = vmul.f32 %v376_v46, %v848_v13  ;;  %v411_v49 = vmul.f32 %v376_v46, %v841_v9  ;;  %v406_v50 = vsel %vm403_vm2, %v405_v44, %v401_v47  ;;  %v380_v51 = vsub.f32 1.0, %v379_v45 }
 0x24d   : > { %v414_v52 = vmul.f32 %v406_v50, %v825_v0  ;;  %v415_v53 = vmul.f32 %v406_v50, %v827_v1  ;;  %v390_v0 = vor.u32 1.1754944e-38, %v389_v54 }
 0x24e   : > { %418 = vst [vmem:[%s891_s22 + $0x10] sm:$0xff] %v410_v48  ;;  %v381_v55 = vmul.f32 %v606_v15, %v380_v51 }
 0x24f   : > { %419 = vst.msk [vmem:[%s891_s22 + $0x18] sm:$0xff] %vm199_vm0, %v411_v49 }
 0x250   : > { %422 = vst [vmem:[%s891_s22 + $0x30] sm:$0xff] %v414_v52  ;;  %v382_v9 = vadd.f32 %v606_v15, %v381_v55 }
 0x251   : > { %423 = vst.msk [vmem:[%s891_s22 + $0x38] sm:$0xff] %vm199_vm0, %v415_v53 }
 0x252   : > { %v386_v1 = vsel %vm385_vm5, %v606_v15, %v382_v9 }
 0x253   : > { %v391_v13 = vsel %vm388_vm6, %v390_v0, %v386_v1 }
 0x254   : > { %v412_v57 = vmul.f32 %v391_v13, %v829_v2  ;;  %v413_v58 = vmul.f32 %v391_v13, %v835_v5 }
 0x256   : > { %420 = vst [vmem:[%s891_s22 + $0x20] sm:$0xff] %v412_v57 }
 0x257   : > { %421 = vst.msk [vmem:[%s891_s22 + $0x28] sm:$0xff] %vm199_vm0, %v413_v58 }
 0x258   : > { %664 = shalt.err (!%p661_p4)
}
 0x259   : > { %s707_s29 = smov 256   ;;  %s708_s17 = smov 16  }
 0x25a   : > { %543 = dma.vmem_to_hbm [thread:$0]  (%p779_p11), %s438_s30, 1024, %s440_s4, %s425_s6, %s707_s29, %s707_s29, %s708_s17  }
 0x25b PF: > { %s454_s19 = sand.u32 1, %s691_s12   ;;  %p958_p7 = scmp.ge.s32.totalorder %s703_s15, 2 }
 0x25c   : > { %s455_s20 = scalar_lea.sflag [#allocation4], %s454_s19 }
 0x25d   : > { %p550_p5 = pnand %p958_p7, %p783_p12 }
 0x25f   : > { %p551_p8 = pneg %p550_p5 }
 0x261   : > { %686 = dma.done.wait (%p551_p8), %s455_s20, 1024  }
 0x262   : > { %688 = vsyncadd (%p551_p8), %s455_s20, 4294966272  ;;  %p16_p10 = scmp.ge.s32.totalorder %s754_s18, 4   ;;  %s959_s12 = smov %s695_s13 }
 0x263   : > { %s960_s13 = smov %s699_s14  ;;  %s961_s14 = smov %s766_s21 }
 0x264   : > { %s962_s15 = smov %s754_s18  ;;  %18 = sbr.rel (!%p16_p10) target bundleno = 5 (0x5), region = 77 }
 0x269   :  { %461 = vsyncpa [#allocation3], 1 }
 0x26a   :  { %463 = vsyncpa [#allocation3 + $0x1], 1 }
 0x26b   :  { %464 = vsyncpa [#allocation4], 1 }
 0x26c   :  { %466 = vsyncpa [#allocation4 + $0x1], 1 }

</bundles_post_ra>
